<compile_context>
chip_gen: v7x
topology: tpu7x:2x2x1
jax: 0.10.0
libtpu: 0.0.40
codegen_flags: <defaults>
</compile_context>

<pallas_src>
import functools

import jax
import jax.numpy as jnp
import numpy as np
from jax.experimental import pallas as pl
from jax.experimental.pallas import tpu as pltpu


# ---- config (mirrors RotaryEmbedding.__init__) -----------------------------
LM_HIDDEN_DIM = 32
LM_N_HEADS = 2
HEAD_DIM = LM_HIDDEN_DIM // LM_N_HEADS        # 16  (cfg.lm_hidden_dim // cfg.lm_n_heads)
HALF_DIM = HEAD_DIM // 2                      # 8
RE_BASE = 10000.0                             # cfg.lm_re_base
MAX_POS_EMB = 64                              # cfg.lm_max_position_embeddings
ATTN_SCALING = 1.0                            # cfg.lm_attn_scaling

_LANES = 128                                  # TPU lane width
_N_CHUNKS = 3                                 # 8-bit position chunks -> exact for pos < 2**24


def _rope_kernel(pos_ref, expand_ref, inv_ref, cos_ref, sin_ref, *, attn_scaling):
    """One (rows, 128)-lane tile of the folded cos/sin tables.

    pos_ref    : (rows, 3g) f32   8-bit position chunks [hi2 | hi | lo], g = 128 // head_dim
    expand_ref : (3g, 128) f32    static 0/weight lane-expansion matrix (weights 65536/256/1)
    inv_ref    : (1, 128) f32     [inv_freq, inv_freq] x g lane pattern, dynamic rescale baked in
    cos_ref / sin_ref : (rows, 128) out dtype (lane-dense folded outputs)
    """
    # Exact lane expansion + chunk recombination in one tiny MXU matmul.
    pos_e = jnp.dot(pos_ref[...], expand_ref[...],
                    preferred_element_type=jnp.float32)          # == float(position), exact
    freqs = pos_e * inv_ref[...]                                  # single f32 rounding (== ref)
    cos = jnp.cos(freqs)
    sin = jnp.sin(freqs)
    if attn_scaling != 1.0:                                       # compile-time skip when 1.0
        cos = cos * jnp.float32(attn_scaling)
        sin = sin * jnp.float32(attn_scaling)
    cos_ref[...] = cos.astype(cos_ref.dtype)
    sin_ref[...] = sin.astype(sin_ref.dtype)


def make_inv_freq(dim=HEAD_DIM, base=RE_BASE):
    # inv_freq = 1 / base ** (arange(0, dim, 2) / dim)
    return 1.0 / (base ** (jnp.arange(0, dim, 2, dtype=jnp.float32) / dim))


@functools.partial(
    jax.jit,
    static_argnames=("max_pos_emb", "attn_scaling", "tile_rows", "out_dtype"),
)
def rotary_embedding(position_ids, inv_freq, *, max_pos_emb=MAX_POS_EMB,
                     attn_scaling=ATTN_SCALING, tile_rows=2048,
                     out_dtype=jnp.float32):
    """cos, sin tables of shape (B, S, head_dim), matching the PyTorch forward."""
    B, S = position_ids.shape
    half = inv_freq.shape[0]
    dim = 2 * half
    assert _LANES % dim == 0, "head_dim must divide 128 for the lane-dense fold"
    assert tile_rows % 8 == 0
    g = _LANES // dim                         # positions packed per 128-lane row

    position_ids = position_ids.astype(jnp.int32)

    # ---- hoisted dynamic rescale (global max must NOT be computed per tile) ----
    max_seq = jnp.max(position_ids) + 1
    scale = jnp.where(
        max_seq > max_pos_emb,
        max_seq.astype(jnp.float32) / jnp.float32(max_pos_emb),
        jnp.float32(1.0),
    )
    inv_eff = inv_freq.astype(jnp.float32) / scale                     # (half,)
    # Per-lane inv_freq pattern of one 128-lane row holding g consecutive
    # positions x head_dim dims, with the [freqs, freqs] duplication baked in.
    inv_row = jnp.tile(jnp.concatenate([inv_eff, inv_eff]), g).reshape(1, _LANES)

    # ---- fold (B, S, dim) == (B, nr, 128) row-major (free reshape) ----
    s_pad = pl.cdiv(S, g) * g
    if s_pad != S:
        position_ids = jnp.pad(position_ids, ((0, 0), (0, s_pad - S)))
    nr = s_pad // g
    pos_folded = position_ids.reshape(B, nr, g)

    # 8-bit chunk split (tiny XLA ops on the small integer input) so the in-kernel
    # MXU expansion is exact for positions < 2**24 (the f32-exact domain).
    chunks = [((pos_folded >> (8 * (_N_CHUNKS - 1 - c))) & 255).astype(jnp.float32)
              for c in range(_N_CHUNKS)]
    pos_chunks = jnp.concatenate(chunks, axis=-1)                      # (B, nr, 3g)

    # Static 0/weight expansion matrix: row c*g + q covers lanes [q*dim, (q+1)*dim)
    # with weight 256**(chunks-1-c).  Built once (trace-time numpy constant) and
    # kept resident in VMEM (block index never changes across the grid).
    rows_idx = np.arange(_N_CHUNKS * g)
    weights = (256.0 ** np.arange(_N_CHUNKS - 1, -1, -1)).astype(np.float32)
    in_group = (np.arange(_LANES)[None, :] // dim) == (rows_idx % g)[:, None]
    expand = jnp.asarray(
        np.where(in_group, weights[rows_idx // g][:, None], 0.0).astype(np.float32))

    tr = nr if nr <= tile_rows else tile_rows
    grid = (B, pl.cdiv(nr, tr))

    kernel = functools.partial(_rope_kernel, attn_scaling=float(attn_scaling))
    cos_f, sin_f = pl.pallas_call(
        kernel,
        grid=grid,
        in_specs=[
            pl.BlockSpec((None, tr, _N_CHUNKS * g), lambda b, r: (b, r, 0)),
            pl.BlockSpec((_N_CHUNKS * g, _LANES), lambda b, r: (0, 0)),
            pl.BlockSpec((1, _LANES), lambda b, r: (0, 0)),
        ],
        out_specs=(
            pl.BlockSpec((None, tr, _LANES), lambda b, r: (b, r, 0)),
            pl.BlockSpec((None, tr, _LANES), lambda b, r: (b, r, 0)),
        ),
        out_shape=(
            jax.ShapeDtypeStruct((B, nr, _LANES), out_dtype),
            jax.ShapeDtypeStruct((B, nr, _LANES), out_dtype),
        ),
        compiler_params=pltpu.CompilerParams(
            dimension_semantics=("parallel", "parallel")),
    )(pos_chunks, expand, inv_row)

    cos = cos_f.reshape(B, s_pad, dim)
    sin = sin_f.reshape(B, s_pad, dim)
    if s_pad != S:
        cos = cos[:, :S]
        sin = sin[:, :S]
    return cos, sin


def rotary_embedding_ref(position_ids, inv_freq, *, max_pos_emb=MAX_POS_EMB,
                         attn_scaling=ATTN_SCALING):
    """Pure-JAX reference mirroring the PyTorch forward exactly."""
    B, S = position_ids.shape
    max_seq = jnp.max(position_ids) + 1
    scale = jnp.where(
        max_seq > max_pos_emb,
        max_seq.astype(jnp.float32) / jnp.float32(max_pos_emb),
        jnp.float32(1.0),
    )
    inv = inv_freq.astype(jnp.float32) / scale
    flat = position_ids.reshape(-1).astype(jnp.float32)
    freqs = (flat[:, None] * inv[None, :]).reshape(B, S, -1)
    emb = jnp.concatenate([freqs, freqs], axis=-1)
    return jnp.cos(emb) * attn_scaling, jnp.sin(emb) * attn_scaling


if __name__ == "__main__":
    inv_freq = make_inv_freq()

    # Shapes consistent with the module: batch=2, seq=8, head_dim=16.
    # Positions in [0, 128) exceed MAX_POS_EMB=64 -> exercises dynamic rescale.
    B, S = 2, 8
    position_ids = jax.random.randint(jax.random.PRNGKey(0), (B, S), 0, 128,
                                      dtype=jnp.int32)
    cos, sin = rotary_embedding(position_ids, inv_freq)
    jax.block_until_ready((cos, sin))
    cos_r, sin_r = rotary_embedding_ref(position_ids, inv_freq)
    # atol headroom only for tiny Mosaic-vs-XLA sin/cos implementation deltas;
    # the trig arguments themselves are bit-identical to the reference.
    np.testing.assert_allclose(np.asarray(cos), np.asarray(cos_r), rtol=1e-6, atol=1e-5)
    np.testing.assert_allclose(np.asarray(sin), np.asarray(sin_r), rtol=1e-6, atol=1e-5)

    # Second check: seq not a multiple of the lane fold (padding path) and
    # positions > 2**16 (exercises all three 8-bit chunks of the exact expansion).
    B2, S2 = 2, 44
    pos2 = jax.random.randint(jax.random.PRNGKey(1), (B2, S2), 0, 70000,
                              dtype=jnp.int32)
    cos2, sin2 = rotary_embedding(pos2, inv_freq)
    jax.block_until_ready((cos2, sin2))
    cos2_r, sin2_r = rotary_embedding_ref(pos2, inv_freq)
    np.testing.assert_allclose(np.asarray(cos2), np.asarray(cos2_r), rtol=1e-6, atol=1e-5)
    np.testing.assert_allclose(np.asarray(sin2), np.asarray(sin2_r), rtol=1e-6, atol=1e-5)

    print("KERNEL_OK")
</pallas_src>

<mosaic_0001>
module attributes {stable_mosaic.version = 11 : i64} {
  func.func @_rope_kernel(%arg0: i32, %arg1: i32, %arg2: memref<1x1x24xf32, #tpu.memory_space<vmem>>, %arg3: memref<24x128xf32, #tpu.memory_space<vmem>>, %arg4: memref<1x128xf32, #tpu.memory_space<vmem>>, %arg5: memref<1x1x128xf32, #tpu.memory_space<vmem>>, %arg6: memref<1x1x128xf32, #tpu.memory_space<vmem>>) attributes {dimension_semantics = [#tpu.dimension_semantics<parallel>, #tpu.dimension_semantics<parallel>], iteration_bounds = array<i64: 2, 1>, scalar_prefetch = 0 : i64, scratch_operands = 0 : i64, tpu.core_type = #tpu.core_type<tc>, window_params = [{transform_indices = @transform_0, window_bounds = array<i64: 1, 1, 24>}, {pipeline_mode = #tpu.pipeline_mode<synchronous>, transform_indices = @transform_1, window_bounds = array<i64: 24, 128>}, {pipeline_mode = #tpu.pipeline_mode<synchronous>, transform_indices = @transform_2, window_bounds = array<i64: 1, 128>}, {transform_indices = @transform_3, window_bounds = array<i64: 1, 1, 128>}, {transform_indices = @transform_4, window_bounds = array<i64: 1, 1, 128>}]} {
    %c0 = arith.constant 0 : index
    %c0_0 = arith.constant 0 : index
    %c0_1 = arith.constant 0 : index
    %0 = vector.load %arg2[%c0, %c0_0, %c0_1] : memref<1x1x24xf32, #tpu.memory_space<vmem>>, vector<1x1x24xf32>
    %1 = vector.shape_cast %0 : vector<1x1x24xf32> to vector<1x24xf32>
    %c0_2 = arith.constant 0 : index
    %c0_3 = arith.constant 0 : index
    %2 = vector.load %arg3[%c0_2, %c0_3] : memref<24x128xf32, #tpu.memory_space<vmem>>, vector<24x128xf32>
    %cst = arith.constant dense<0.000000e+00> : vector<1x128xf32>
    %3 = tpu.matmul %1, %2, %cst {dimension_numbers = #tpu.dot_dimension_numbers<[1], [0], [0], [1], [0, 0, 1, 1], [], []>} : vector<1x24xf32>, vector<24x128xf32>, vector<1x128xf32> -> vector<1x128xf32>
    %c0_4 = arith.constant 0 : index
    %c0_5 = arith.constant 0 : index
    %4 = vector.load %arg4[%c0_4, %c0_5] : memref<1x128xf32, #tpu.memory_space<vmem>>, vector<1x128xf32>
    %5 = arith.mulf %3, %4 : vector<1x128xf32>
    %6 = math.cos %5 : vector<1x128xf32>
    %7 = math.sin %5 : vector<1x128xf32>
    %c0_6 = arith.constant 0 : index
    %c0_7 = arith.constant 0 : index
    %c0_8 = arith.constant 0 : index
    %8 = vector.load %arg5[%c0_6, %c0_7, %c0_8] : memref<1x1x128xf32, #tpu.memory_space<vmem>>, vector<1x1x128xf32>
    %9 = vector.shape_cast %8 : vector<1x1x128xf32> to vector<1x128xf32>
    %10 = vector.shape_cast %6 : vector<1x128xf32> to vector<1x1x128xf32>
    tpu.vector_store %arg5[%c0_6, %c0_7, %c0_8], %10 {strides = array<i32>} : memref<1x1x128xf32, #tpu.memory_space<vmem>>, vector<1x1x128xf32>,
    %c0_9 = arith.constant 0 : index
    %c0_10 = arith.constant 0 : index
    %c0_11 = arith.constant 0 : index
    %11 = vector.load %arg6[%c0_9, %c0_10, %c0_11] : memref<1x1x128xf32, #tpu.memory_space<vmem>>, vector<1x1x128xf32>
    %12 = vector.shape_cast %11 : vector<1x1x128xf32> to vector<1x128xf32>
    %13 = vector.shape_cast %7 : vector<1x128xf32> to vector<1x1x128xf32>
    tpu.vector_store %arg6[%c0_9, %c0_10, %c0_11], %13 {strides = array<i32>} : memref<1x1x128xf32, #tpu.memory_space<vmem>>, vector<1x1x128xf32>,
    return
  }
  func.func @transform_0(%arg0: i32, %arg1: i32) -> (i32, i32, i32) {
    %c0_i32 = arith.constant 0 : i32
    %c0_i32_0 = arith.constant 0 : i32
    return %arg0, %arg1, %c0_i32 : i32, i32, i32
  }
  func.func @transform_1(%arg0: i32, %arg1: i32) -> (i32, i32) {
    %c0_i32 = arith.constant 0 : i32
    %c0_i32_0 = arith.constant 0 : i32
    %c0_i32_1 = arith.constant 0 : i32
    return %c0_i32, %c0_i32_0 : i32, i32
  }
  func.func @transform_2(%arg0: i32, %arg1: i32) -> (i32, i32) {
    %c0_i32 = arith.constant 0 : i32
    %c0_i32_0 = arith.constant 0 : i32
    %c0_i32_1 = arith.constant 0 : i32
    return %c0_i32, %c0_i32_0 : i32, i32
  }
  func.func @transform_3(%arg0: i32, %arg1: i32) -> (i32, i32, i32) {
    %c0_i32 = arith.constant 0 : i32
    %c0_i32_0 = arith.constant 0 : i32
    return %arg0, %arg1, %c0_i32 : i32, i32, i32
  }
  func.func @transform_4(%arg0: i32, %arg1: i32) -> (i32, i32, i32) {
    %c0_i32 = arith.constant 0 : i32
    %c0_i32_0 = arith.constant 0 : i32
    return %arg0, %arg1, %c0_i32 : i32, i32, i32
  }
}

</mosaic_0001>

<bundles_post_ra>
// kernel: tile.8
= control target key start
LH: loop header
LB: loop body
LE: loop exit
PB: predicated region body
PF: predicated region fallthrough
CT: control target
= control target key end

     0   :  { %s22_s0 = inlined_call_operand.vmem [shape: f32[16], index: 0, kind: input, shape index: {}]   ;;  %s23_s1 = inlined_call_operand.vmem [shape: f32[8,16], index: 1, kind: output, shape index: {}]  }
   0x1   :  { %v4_v0 = vld [vmem:[%s22_s0] ss:$0 sm:$0xff] }
   0x2   :  { %5 = vst [vmem:[%s23_s1] sm:$0xff] %v4_v0 }

// kernel: tile.9
= control target key start
LH: loop header
LB: loop body
LE: loop exit
PB: predicated region body
PF: predicated region fallthrough
CT: control target
= control target key end

     0   :  { %s67_s10 = smov 112   ;;  %s68_s11 = smov 80   ;;  %vm3_vm0 = vcmask 130048   ;;  %vm9_vm1 = vcmask 1048448   ;;  %vm15_vm2 = vcmask 917248   ;;  %vm21_vm3 = vcmask 786048   ;;  %s111_s0 = inlined_call_operand.vmem [shape: f32[8,16], index: 0, kind: input, shape index: {}]   ;;  %s112_s1 = inlined_call_operand.vmem [shape: f32[1,128], index: 1, kind: output, shape index: {}]  }
   0x1   :  { %v53_v0 = vld [vmem:[%s111_s0 + $0x7] sm:$0x1]   ;;  %v55_v1 = vld [vmem:[%s111_s0 + $0x5] sm:$0x1]   ;;  %v54_v2 = vld [vmem:[%s111_s0 + $0x6] sm:$0x1]  }
   0x2   :  { %7 = vrot.lane.b32.xlu0 %v53_v0, %s67_s10  ;;  %19 = vrot.lane.b32.xlu1 %v55_v1, %s68_s11  ;;  %v56_v3 = vld [vmem:[%s111_s0 + $0x4] sm:$0x1]   ;;  %v2_v4 = vld [vmem:[%s111_s0] sm:$0x1]   ;;  %s69_s18 = smov 96   ;;  %s70_s19 = smov 64  }
   0x3   :  { %4 = vst.msk [vmem:[#allocation0] sm:$0x1] %vm3_vm0, %v2_v4   ;;  %v57_v5 = vld [vmem:[%s111_s0 + $0x3] sm:$0x1]   ;;  %v58_v6 = vld [vmem:[%s111_s0 + $0x2] sm:$0x1]  }
   0x4   :  { %s71_s24 = smov 48   ;;  %s72_s25 = smov 32   ;;  %v59_v7 = vld [vmem:[%s111_s0 + $0x1] sm:$0x1]   ;;  %vm27_vm4 = vcmask 654848   ;;  %vm33_vm5 = vcmask 523648  }
   0x5   :  { %s73_s0 = smov 16   ;;  %vm39_vm6 = vcmask 392448   ;;  %vm45_vm7 = vcmask 261248  }
   0x6   :  { %13 = vrot.lane.b32.xlu0 %v54_v2, %s69_s18  ;;  %25 = vrot.lane.b32.xlu1 %v56_v3, %s70_s19 }
   0xa   :  { %31 = vrot.lane.b32.xlu0 %v57_v5, %s71_s24  ;;  %37 = vrot.lane.b32.xlu1 %v58_v6, %s72_s25 }
   0xe   :  { %43 = vrot.lane.b32.xlu0 %v59_v7, %s73_s0 }
  0x74   :  { %v8_v8 = vpop.permute.xlu0 %7   ;;  %v20_v9 = vpop.permute.xlu1 %19  }
  0x75   :  { %10 = vst.msk [vmem:[#allocation0] sm:$0x1] %vm9_vm1, %v8_v8  }
  0x78   :  { %v14_v10 = vpop.permute.xlu0 %13   ;;  %v26_v11 = vpop.permute.xlu1 %25  }
  0x79   :  { %16 = vst.msk [vmem:[#allocation0] sm:$0x1] %vm15_vm2, %v14_v10  }
  0x7a   :  { %22 = vst.msk [vmem:[#allocation0] sm:$0x1] %vm21_vm3, %v20_v9  }
  0x7b   :  { %28 = vst.msk [vmem:[#allocation0] sm:$0x1] %vm27_vm4, %v26_v11  }
  0x7c   :  { %v32_v12 = vpop.permute.xlu0 %31   ;;  %v38_v13 = vpop.permute.xlu1 %37  }
  0x7d   :  { %34 = vst.msk [vmem:[#allocation0] sm:$0x1] %vm33_vm5, %v32_v12  }
  0x7e   :  { %40 = vst.msk [vmem:[#allocation0] sm:$0x1] %vm39_vm6, %v38_v13  }
  0x80   :  { %v44_v14 = vpop.permute.xlu0 %43  }
  0x81   :  { %46 = vst.msk [vmem:[#allocation0] sm:$0x1] %vm45_vm7, %v44_v14  }
  0x88   :  { %v50_v15 = vld [vmem:[#allocation0] sm:$0x1] }
  0x89   :  { %52 = vst [vmem:[%s112_s1] sm:$0x1] %v50_v15 }

// kernel: rotary_embedding.1
= control target key start
LH: loop header
LB: loop body
LE: loop exit
PB: predicated region body
PF: predicated region fallthrough
CT: control target
= control target key end

     0   :  { %s756_s15 = smov 0   ;;  %s758_s16 = smov 0   ;;  %s830_s0 = inlined_call_operand.vmem [shape: f32[2,1,24], index: 0, kind: input, shape index: {}]   ;;  %s831_s1 = inlined_call_operand.vmem [shape: f32[24,128], index: 1, kind: input, shape index: {}]   ;;  %s832_s2 = inlined_call_operand.vmem [shape: f32[1,128], index: 2, kind: input, shape index: {}]   ;;  %s833_s3 = inlined_call_operand.vmem [shape: f32[2,1,128], index: 3, kind: output, shape index: {0}]   ;;  %s834_s4 = inlined_call_operand.vmem [shape: f32[2,1,128], index: 4, kind: output, shape index: {1}]  }
   0x1   :  { %s760_s17 = smov 0  }
   0x2 LB: > { %s27_s18 = sadd.s32 1, %s716_s16  ;;  %p629_p0 = scmp.ge.s32.totalorder %s720_s17, 1  ;;  %s720_s17 = sphi %s760_s17, %s15_s17   ;;  %s716_s16 = sphi %s758_s16, %s836_s16   ;;  %s712_s15 = sphi %s756_s15, %s835_s15  }
   0x3   : > { %p29_p1 = scmp.ge.s32.totalorder %s27_s18, 2  ;;  %p184_p2 = scmp.lt.s32.totalorder %s720_s17, 3 }
   0x5   : > { %s838_s18 = smov (%p29_p1, %s27_s18), 0  ;;  %p185_p3 = pnand %p629_p0, %p184_p2 }
   0x6   : > { %v237_v0 = vld [vmem:[%s831_s1] sm:$0xff] (!%p185_p3)  ;;  %v238_v1 = vld [vmem:[%s831_s1 + $0x8] sm:$0xff] (!%p185_p3)  ;;  %v722_v2 = vmov (!%p185_p3), 0.0|0.0   ;;  %vm723_vm0 = vmmov (!%p185_p3), 0   ;;  %v724_v4 = vmov (!%p185_p3), 0.0   ;;  %p218_p4 = scmp.lt.s32.totalorder (!%p185_p3), %s712_s15, 1 }
   0x7   : > { %188 = sbr.rel (%p185_p3) target bundleno = 311 (0x137), region = 32  ;;  %654 = vmatprep.subr.bf16.mxu0 (!%p185_p3), %v722_v2  ;;  %v655_v3 = vpack.c.bf16 (!%p185_p3), %v238_v1, %v237_v0  ;;  %651 = vmatprep.mubr.msk.f32.mxu0 (!%p185_p3), %vm723_vm0, %v724_v4  ;;  %v239_v5 = vld [vmem:[%s831_s1 + $0x10] sm:$0xff] (!%p185_p3)  ;;  %vm240_vm1 = vcmask (!%p185_p3), 195584   ;;  %v314_v7 = vld [vmem:[%s832_s2] sm:$0x1] (!%p185_p3) }
   0x8   : > { %v725_v21 = vmov (!%p185_p3), 683565275   ;;  %v726_v23 = vmov (!%p185_p3), 2475754826   ;;  %v727_v26 = vmov (!%p185_p3), 2131351028  }
   0x9   : > { %656 = vmatpush3.bf16.msra.mxu0 (!%p185_p3), %v655_v3  ;;  %v728_v29 = vmov (!%p185_p3), 2102212464   ;;  %v729_v32 = vmov (!%p185_p3), 920167782   ;;  %v730_v35 = vmov (!%p185_p3), 1326507024  }
   0xa   : > { %649 = vmatprep.subr.mxu0 (!%p185_p3), %v724_v4 }
   0xd   : > { %650 = vmatpush3.msra.mxu0 (!%p185_p3), %v239_v5 }
   0xe   : > { %s840_s15 = smov (!%p218_p4, %s712_s15), 1 }
   0xf   : > { %s223_s27 = scalar_lea.vmem %s830_s0, %s840_s15  ;;  %s229_s6 = scalar_lea.vmem %s833_s3, %s840_s15 }
  0x10   : > { %v236_v6 = vld [vmem:[%s223_s27] sm:$0x1]  ;;  %s235_s9 = scalar_lea.vmem %s834_s4, %s840_s15 }
  0x11   : > { %652 = vmatmul.mubr.msk.f32.vlgmr.msra.gmra.mrb[0].mxu0 %vm240_vm1, %v236_v6 }
  0xe4   : > { %v310_v8 = vpop.f32.mrb[0].mxu0 }
  0xe5   : > { %v792_v9 = vmul.f32 %v314_v7, %v310_v8  ;;  %v653_v10 = vpop.f32.mrb[1].mxu0 }
  0xe7   : > { %v319_v11 = vand.u32 2139095040, %v792_v9  ;;  %v316_v15 = vand.u32 2147483647, %v792_v9  ;;  %vm318_vm9 = vcmp.lt.s32.totalorder %v792_v9, 0  ;;  %vm408_vm1 = vweird.f32 %v792_v9 }
  0xe9   : > { %v320_v12 = vshrl.u32 %v319_v11, 23  ;;  %v323_v18 = vand.u32 8388607, %v316_v15  ;;  %vm317_vm10 = vcmp.le.f32.partialorder %v316_v15, 0.7853982 }
  0xeb   : > { %v631_v13 = vadd.s32 4294967169, %v320_v12  ;;  %v324_v37 = vor.u32 8388608, %v323_v18 }
  0xed   : > { %v326_v14 = vadd.s32 1, %v631_v13  ;;  %v364_v51 = vshll.u32 %v324_v37, 8 }
  0xef   : > { %vm327_vm2 = vcmp.gt.s32.totalorder %v326_v14, 0 }
  0xf0   : > { %v328_v16 = vsel %vm327_vm2, %v326_v14, 0 }
  0xf1   : > { %v330_v17 = vand.u32 31, %v328_v16  ;;  %v329_v20 = vshrl.u32 %v328_v16, 5 }
  0xf3   : > { %v331_v19 = vsub.s32 32, %v330_v17  ;;  %v333_v22 = vshll.u32 %v725_v21, %v330_v17  ;;  %v336_v24 = vshll.u32 %v726_v23, %v330_v17  ;;  %v339_v28 = vshll.u32 %v727_v26, %v330_v17 }
  0xf4   : > { %v342_v31 = vshll.u32 %v728_v29, %v330_v17  ;;  %v345_v34 = vshll.u32 %v729_v32, %v330_v17  ;;  %vm348_vm3 = vcmp.lt.s32.totalorder %v329_v20, 1  ;;  %vm351_vm4 = vcmp.lt.s32.totalorder %v329_v20, 4 }
  0xf5   : > { %v334_v25 = vshrl.u32 %v726_v23, %v331_v19  ;;  %v337_v27 = vshrl.u32 %v727_v26, %v331_v19  ;;  %v340_v30 = vshrl.u32 %v728_v29, %v331_v19  ;;  %v343_v33 = vshrl.u32 %v729_v32, %v331_v19 }
  0xf6   : > { %v346_v36 = vshrl.u32 %v730_v35, %v331_v19  ;;  %v332_v46 = vshrl.u32 %v725_v21, %v331_v19  ;;  %vm350_vm5 = vcmp.lt.s32.totalorder %v329_v20, 3  ;;  %vm349_vm6 = vcmp.lt.s32.totalorder %v329_v20, 2 }
  0xf7   : > { %v335_v38 = vor.u32 %v334_v25, %v333_v22  ;;  %v338_v39 = vor.u32 %v337_v27, %v336_v24  ;;  %v341_v40 = vor.u32 %v340_v30, %v339_v28  ;;  %v344_v41 = vor.u32 %v343_v33, %v342_v31 }
  0xf8   : > { %v347_v42 = vor.u32 %v346_v36, %v345_v34 }
  0xf9   : > { %v353_v43 = vsel %vm351_vm4, %v341_v40, 2102212464  ;;  %v356_v44 = vsel %vm348_vm3, %v335_v38, %v338_v39  ;;  %v360_v45 = vsel %vm348_vm3, %v338_v39, %v341_v40  ;;  %v357_v47 = vsel %vm351_vm4, %v344_v41, 920167782 }
  0xfa   : > { %v361_v48 = vsel %vm351_vm4, %v347_v42, 1326507024  ;;  %v358_v49 = vsel %vm350_vm5, %v341_v40, %v357_v47  ;;  %v352_v52 = vsel %vm348_vm3, %v332_v46, %v335_v38  ;;  %v354_v53 = vsel %vm350_vm5, %v338_v39, %v353_v43 }
  0xfb   : > { %v362_v50 = vsel %vm350_vm5, %v344_v41, %v361_v48  ;;  %v359_v54 = vsel %vm349_vm6, %v356_v44, %v358_v49  ;;  %v355_v60 = vsel %vm349_vm6, %v352_v52, %v354_v53 }
  0xfc   : > { %v363_v55 = vsel %vm349_vm6, %v360_v45, %v362_v50  ;;  %v801_v58 = vmul.u32.u64.low %v364_v51, %v359_v54  ;;  %v802_v59 = vmul.u32.u64.high %v364_v51, %v359_v54, %v801_v58  ;;  %v371_v62 = vmul.u32 %v364_v51, %v355_v60 }
  0xfd   : > { %v798_v56 = vmul.u32.u64.low %v364_v51, %v363_v55  ;;  %v799_v57 = vmul.u32.u64.high %v364_v51, %v363_v55, %v798_v56 }
  0xfe   : > { %v374_v61 = vadd.s32 1, %v802_v59 }
  0xff   : > { %vm373_vm7 = vc.u32 %v799_v57, %v801_v58  ;;  %v372_v11 = vadd.s32 %v801_v58, %v799_v57 }
 0x100   : > { %v375_v63 = vsel %vm373_vm7, %v374_v61, %v802_v59 }
 0x101   : > { %v376_v0 = vadd.s32 %v375_v63, %v371_v62 }
 0x103   : > { %v377_v1 = vadd.s32 536870912, %v376_v0 }
 0x105   : > { %v378_v2 = vshrl.u32 %v377_v1, 30 }
 0x107   : > { %v379_v3 = vshll.u32 %v378_v2, 30  ;;  %v402_v24 = vsub.s32 4, %v378_v2 }
 0x109   : > { %v380_v4 = vsub.s32 %v376_v0, %v379_v3  ;;  %v403_v27 = vsel %vm318_vm9, %v402_v24, %v378_v2 }
 0x10a   : > { %v405_v29 = vsel %vm317_vm10, 0, %v403_v27 }
 0x10b   : > { %v382_v5 = vsub.s32 0, %v380_v4  ;;  %v512_v30 = vadd.s32 3, %v405_v29  ;;  %v409_v31 = vand.u32 3, %v405_v29 }
 0x10d   : > { %v632_v6 = vmin.u32 %v382_v5, %v380_v4  ;;  %v513_v32 = vand.u32 3, %v512_v30  ;;  %vm414_vm11 = vcmp.eq.s32.totalorder %v409_v31, 2  ;;  %vm411_vm13 = vcmp.eq.s32.totalorder %v409_v31, 0 }
 0x10e   : > { %vm410_vm15 = vcmp.lt.s32.totalorder %v409_v31, 2 }
 0x10f   : > { %v384_v7 = vclz %v632_v6  ;;  %vm518_vm12 = vcmp.eq.s32.totalorder %v513_v32, 2  ;;  %vm515_vm14 = vcmp.eq.s32.totalorder %v513_v32, 0  ;;  %vm514_vm0 = vcmp.lt.s32.totalorder %v513_v32, 2 }
 0x111   : > { %v633_v8 = vadd.s32 4294967294, %v384_v7 }
 0x113   : > { %vm634_vm8 = vcmp.lt.s32.totalorder %v633_v8, 0 }
 0x114   : > { %v387_v10 = vsel %vm634_vm8, 0, %v633_v8 }
 0x115   : > { %v388_v12 = vsub.s32 32, %v387_v10  ;;  %v392_v13 = vsub.s32 4294967266, %v387_v10  ;;  %v389_v14 = vshll.u32 %v380_v4, %v387_v10 }
 0x117   : > { %v390_v16 = vshrl.u32 %v372_v11, %v388_v12  ;;  %v393_v17 = vadd.s32 127, %v392_v13 }
 0x119   : > { %v391_v18 = vor.u32 %v390_v16, %v389_v14  ;;  %v394_v19 = vshll.u32 %v393_v17, 23 }
 0x11b   : > { %v395_v20 = vor.u32 4788187, %v394_v19  ;;  %v398_v22 = vcvt.s32.f32 %v391_v18 }
 0x11d   : > { %v396_v21 = vand.u32 2147483647, %v395_v20 }
 0x11f   : > { %v399_v23 = vmul.f32 %v398_v22, %v396_v21 }
 0x121   : > { %v400_v25 = vxor.u32 2147483648, %v399_v23 }
 0x123   : > { %v401_v26 = vsel %vm318_vm9, %v400_v25, %v399_v23 }
 0x124   : > { %v404_v28 = vsel %vm317_vm10, %v792_v9, %v401_v26 }
 0x125   : > { %694 = vcosq.f32 %v404_v28 }
 0x126   : > { %696 = vsinq.f32 %v404_v28 }
 0x12f   : > { %v695_v33 = vpop.eup %694 }
 0x130   : > { %v697_v34 = vpop.eup %696  ;;  %v415_v35 = vxor.u32 2147483648, %v695_v33 }
 0x131   : > { %v412_v36 = vxor.u32 2147483648, %v697_v34 }
 0x132   : > { %v416_v15 = vsel %vm414_vm11, %v415_v35, %v697_v34  ;;  %v520_v37 = vsel %vm518_vm12, %v415_v35, %v697_v34 }
 0x133   : > { %v413_v38 = vsel %vm411_vm13, %v695_v33, %v412_v36  ;;  %v517_v39 = vsel %vm515_vm14, %v695_v33, %v412_v36 }
 0x134   : > { %v417_v40 = vsel %vm410_vm15, %v413_v38, %v416_v15  ;;  %v521_v41 = vsel %vm514_vm0, %v517_v39, %v520_v37 }
 0x135   : > { %v418_v42 = vsel %vm408_vm1, nan, %v417_v40  ;;  %v522_v43 = vsel %vm408_vm1, nan, %v521_v41 }
 0x136   : > { %523 = vst [vmem:[%s229_s6] sm:$0x1] %v418_v42  ;;  %524 = vst [vmem:[%s235_s9] sm:$0x1] %v522_v43 }
 0x137 PF: > { %s15_s17 = sadd.s32 1, %s720_s17   ;;  %s835_s15 = smov %s716_s16 }
 0x138   : > { %p12_p5 = scmp.ge.s32.totalorder %s15_s17, 4   ;;  %s836_s16 = smov %s838_s18 }
 0x13a   :  { %14 = sbr.rel (!%p12_p5) target bundleno = 2 (0x2), region = 74 }

</bundles_post_ra>
